<compile_context>
chip_gen: v7x
topology: tpu7x:2x2x1
jax: 0.10.0
libtpu: 0.0.40
codegen_flags: <defaults>
</compile_context>

<pallas_src>
import jax
import jax.numpy as jnp
from jax.experimental import pallas as pl
from jax.experimental.pallas import tpu as pltpu


def _round_up(n, m):
    return ((n + m - 1) // m) * m


def value_mlp_kernel(xa_ref, w1_ref, w2_ref, b2_ref, w3_ref, b3_ref, o_ref):
    # fc1 + relu.  Bias is folded into the matmul via the ones row of xa / the
    # extra b1 column of w1, so this is a single small-K MXU pass.
    h1 = jnp.dot(w1_ref[...], xa_ref[...], preferred_element_type=jnp.float32)
    h1 = jnp.maximum(h1, 0.0)                               # (hidden, TB)

    # fc2 + relu (dominant MXU work; optional bf16 operands, f32 accumulation).
    h2 = jnp.dot(w2_ref[...], h1.astype(w2_ref.dtype),
                 preferred_element_type=jnp.float32) + b2_ref[...]
    h2 = jnp.maximum(h2, 0.0)                               # (hidden, TB)

    # fc3 on VPU + XLU: broadcast multiply by the (hidden, 1) w3 column, then
    # reduce over the hidden (sublane) axis -> lane-dense (1, TB) row.
    out = jnp.sum(w3_ref[...] * h2, axis=0, keepdims=True) + b3_ref[0]
    o_ref[...] = out.astype(o_ref.dtype)                    # unmasked (1, TB) store


def _choose_tile(B, block_b):
    """Batch tile: multiple of 128; prefer >=2 grid steps (v7x megacore)."""
    b128 = _round_up(B, 128)
    tb = min(block_b, b128)
    if b128 >= 256:
        half = (b128 // 2) // 128 * 128          # >= 128, keeps >= 2 steps
        tb = min(tb, max(128, half))
    return max(128, tb)


def value_mlp_forward(x, action, params, *, block_b=4096, use_bf16=False):
    """x: (B, x_dim), action: (B, act_dim), PyTorch-layout params. Returns (B, 1)."""
    w1, b1, w2, b2, w3, b3 = params
    B, x_dim = x.shape
    act_dim = action.shape[1]
    hidden = w1.shape[0]
    in_dim = x_dim + act_dim
    assert w1.shape == (hidden, in_dim)

    TB = _choose_tile(B, block_b)
    Bp = _round_up(B, TB)
    if Bp != B:
        x = jnp.pad(x, ((0, Bp - B), (0, 0)))
        action = jnp.pad(action, ((0, Bp - B), (0, 0)))

    # --- Layout plumbing (wrapper-side, one-time) -------------------------
    # Stacked, bias-augmented, 8-sublane-padded input slab: (K8, Bp).
    K = in_dim + 1                              # +1 ones row folds in b1
    K8 = _round_up(K, 8)
    xa_aug = jnp.concatenate(
        [x.T.astype(jnp.float32),               # (x_dim, Bp)
         action.T.astype(jnp.float32),          # (act_dim, Bp)
         jnp.ones((1, Bp), jnp.float32),        # bias row
         jnp.zeros((K8 - K, Bp), jnp.float32)], # sublane pad
        axis=0)

    # fc1 weight with b1 appended (+ zero pad columns): (hidden, K8).
    w1_aug = jnp.concatenate(
        [w1.astype(jnp.float32), b1.reshape(hidden, 1).astype(jnp.float32),
         jnp.zeros((hidden, K8 - K), jnp.float32)], axis=1)

    w2_k = w2.astype(jnp.bfloat16) if use_bf16 else w2.astype(jnp.float32)
    b2c = b2.reshape(hidden, 1).astype(jnp.float32)
    w3c = w3.reshape(hidden, 1).astype(jnp.float32)   # column for sublane reduce
    b3s = b3.reshape(1,).astype(jnp.float32)          # scalar, lives in SMEM

    grid = (Bp // TB,)

    def resident(shape):          # same block every step -> stays in VMEM
        return pl.BlockSpec(shape, lambda i: (0, 0))

    in_specs = [
        pl.BlockSpec((K8, TB), lambda i: (0, i)),            # xa_aug (streamed)
        resident(w1_aug.shape),                               # w1_aug
        resident(w2_k.shape),                                 # w2
        resident(b2c.shape),                                  # b2
        resident(w3c.shape),                                  # w3 column
        pl.BlockSpec(memory_space=pltpu.MemorySpace.SMEM),    # b3 scalar
    ]
    out_spec = pl.BlockSpec((1, TB), lambda i: (0, i))

    flops = 2 * Bp * (K8 * hidden + hidden * hidden + hidden)
    bytes_accessed = 4 * (Bp * (K8 + 1)
                          + hidden * (K8 + hidden + 2) + 1)
    cost = pl.CostEstimate(flops=flops, transcendentals=0,
                           bytes_accessed=bytes_accessed)

    out_t = pl.pallas_call(
        value_mlp_kernel,
        out_shape=jax.ShapeDtypeStruct((1, Bp), jnp.float32),
        grid=grid,
        in_specs=in_specs,
        out_specs=out_spec,
        compiler_params=pltpu.CompilerParams(
            dimension_semantics=("parallel",)),
        cost_estimate=cost,
    )(xa_aug, w1_aug, w2_k, b2c, w3c, b3s)

    return out_t[0, :B].reshape(B, 1)


def init_params(key, in_dim, hidden_dim):
    """PyTorch nn.Linear layout: W (out, in), b (out,), U(-1/sqrt(fan_in), 1/sqrt(fan_in))."""
    ks = jax.random.split(key, 6)

    def linear(kw, kb, fan_in, fan_out):
        bound = 1.0 / (fan_in ** 0.5)
        w = jax.random.uniform(kw, (fan_out, fan_in), jnp.float32, -bound, bound)
        b = jax.random.uniform(kb, (fan_out,), jnp.float32, -bound, bound)
        return w, b

    w1, b1 = linear(ks[0], ks[1], in_dim, hidden_dim)
    w2, b2 = linear(ks[2], ks[3], hidden_dim, hidden_dim)
    w3, b3 = linear(ks[4], ks[5], hidden_dim, 1)
    return (w1, b1, w2, b2, w3, b3)


def value_mlp_reference(x, action, params):
    w1, b1, w2, b2, w3, b3 = params
    xa = jnp.concatenate([x, action], axis=-1)
    h1 = jnp.maximum(xa @ w1.T + b1, 0.0)
    h2 = jnp.maximum(h1 @ w2.T + b2, 0.0)
    return h2 @ w3.T + b3


if __name__ == "__main__":
    key = jax.random.PRNGKey(0)
    k_x, k_a, k_p = jax.random.split(key, 3)

    batch, x_dim, act_dim, hidden_dim = 8, 2, 1, 128  # module default hidden_dim=128
    x = jax.random.normal(k_x, (batch, x_dim), jnp.float32)
    action = jax.random.normal(k_a, (batch, act_dim), jnp.float32)
    params = init_params(k_p, x_dim + act_dim, hidden_dim)

    out = jax.block_until_ready(value_mlp_forward(x, action, params))
    ref = value_mlp_reference(x, action, params)

    assert out.shape == (batch, 1), out.shape
    assert jnp.allclose(out, ref, atol=1e-4, rtol=1e-4), (
        f"max abs err {jnp.max(jnp.abs(out - ref))}")
    print("KERNEL_OK")
</pallas_src>

<mosaic_0001>
module attributes {stable_mosaic.version = 11 : i64} {
  func.func @value_mlp_kernel(%arg0: i32, %arg1: memref<8x128xf32, #tpu.memory_space<vmem>>, %arg2: memref<128x8xf32, #tpu.memory_space<vmem>>, %arg3: memref<128x128xf32, #tpu.memory_space<vmem>>, %arg4: memref<128x1xf32, #tpu.memory_space<vmem>>, %arg5: memref<128x1xf32, #tpu.memory_space<vmem>>, %arg6: memref<1xf32, #tpu.memory_space<smem>>, %arg7: memref<1x128xf32, #tpu.memory_space<vmem>>) attributes {dimension_semantics = [#tpu.dimension_semantics<parallel>], iteration_bounds = array<i64: 1>, scalar_prefetch = 0 : i64, scratch_operands = 0 : i64, tpu.core_type = #tpu.core_type<tc>, window_params = [{transform_indices = @transform_0, window_bounds = array<i64: 8, 128>}, {pipeline_mode = #tpu.pipeline_mode<synchronous>, transform_indices = @transform_1, window_bounds = array<i64: 128, 8>}, {pipeline_mode = #tpu.pipeline_mode<synchronous>, transform_indices = @transform_2, window_bounds = array<i64: 128, 128>}, {pipeline_mode = #tpu.pipeline_mode<synchronous>, transform_indices = @transform_3, window_bounds = array<i64: 128, 1>}, {pipeline_mode = #tpu.pipeline_mode<synchronous>, transform_indices = @transform_4, window_bounds = array<i64: 128, 1>}, {transform_indices = @transform_5, window_bounds = array<i64: 1>}, {transform_indices = @transform_6, window_bounds = array<i64: 1, 128>}]} {
    %c0 = arith.constant 0 : index
    %c0_0 = arith.constant 0 : index
    %0 = vector.load %arg2[%c0, %c0_0] : memref<128x8xf32, #tpu.memory_space<vmem>>, vector<128x8xf32>
    %c0_1 = arith.constant 0 : index
    %c0_2 = arith.constant 0 : index
    %1 = vector.load %arg1[%c0_1, %c0_2] : memref<8x128xf32, #tpu.memory_space<vmem>>, vector<8x128xf32>
    %cst = arith.constant dense<0.000000e+00> : vector<128x128xf32>
    %2 = tpu.matmul %0, %1, %cst {dimension_numbers = #tpu.dot_dimension_numbers<[1], [0], [0], [1], [0, 0, 1, 1], [], []>} : vector<128x8xf32>, vector<8x128xf32>, vector<128x128xf32> -> vector<128x128xf32>
    %cst_3 = arith.constant 0.000000e+00 : f32
    %3 = vector.broadcast %cst_3 : f32 to vector<128x128xf32>
    %4 = arith.maximumf %2, %3 : vector<128x128xf32>
    %c0_4 = arith.constant 0 : index
    %c0_5 = arith.constant 0 : index
    %5 = vector.load %arg3[%c0_4, %c0_5] : memref<128x128xf32, #tpu.memory_space<vmem>>, vector<128x128xf32>
    %cst_6 = arith.constant dense<0.000000e+00> : vector<128x128xf32>
    %6 = tpu.matmul %5, %4, %cst_6 {dimension_numbers = #tpu.dot_dimension_numbers<[1], [0], [0], [1], [0, 0, 1, 1], [], []>} : vector<128x128xf32>, vector<128x128xf32>, vector<128x128xf32> -> vector<128x128xf32>
    %c0_7 = arith.constant 0 : index
    %c0_8 = arith.constant 0 : index
    %7 = vector.load %arg4[%c0_7, %c0_8] : memref<128x1xf32, #tpu.memory_space<vmem>>, vector<128x1xf32>
    %8 = vector.broadcast %7 : vector<128x1xf32> to vector<128x128xf32>
    %9 = arith.addf %6, %8 : vector<128x128xf32>
    %cst_9 = arith.constant 0.000000e+00 : f32
    %10 = vector.broadcast %cst_9 : f32 to vector<128x128xf32>
    %11 = arith.maximumf %9, %10 : vector<128x128xf32>
    %c0_10 = arith.constant 0 : index
    %c0_11 = arith.constant 0 : index
    %12 = vector.load %arg5[%c0_10, %c0_11] : memref<128x1xf32, #tpu.memory_space<vmem>>, vector<128x1xf32>
    %13 = vector.broadcast %12 : vector<128x1xf32> to vector<128x128xf32>
    %14 = arith.mulf %13, %11 : vector<128x128xf32>
    %cst_12 = arith.constant dense<0.000000e+00> : vector<128xf32>
    %15 = vector.multi_reduction <add>, %14, %cst_12 [0] : vector<128x128xf32> to vector<128xf32>
    %16 = vector.shape_cast %15 : vector<128xf32> to vector<1x128xf32>
    %c0_13 = arith.constant 0 : index
    %17 = memref.load %arg6[%c0_13] : memref<1xf32, #tpu.memory_space<smem>>
    %18 = vector.broadcast %17 : f32 to vector<1x128xf32>
    %19 = arith.addf %16, %18 : vector<1x128xf32>
    %c0_14 = arith.constant 0 : index
    %c0_15 = arith.constant 0 : index
    %20 = vector.load %arg7[%c0_14, %c0_15] : memref<1x128xf32, #tpu.memory_space<vmem>>, vector<1x128xf32>
    tpu.vector_store %arg7[%c0_14, %c0_15], %19 {strides = array<i32>} : memref<1x128xf32, #tpu.memory_space<vmem>>, vector<1x128xf32>,
    return
  }
  func.func @transform_0(%arg0: i32) -> (i32, i32) {
    %c0_i32 = arith.constant 0 : i32
    %c0_i32_0 = arith.constant 0 : i32
    return %c0_i32, %arg0 : i32, i32
  }
  func.func @transform_1(%arg0: i32) -> (i32, i32) {
    %c0_i32 = arith.constant 0 : i32
    %c0_i32_0 = arith.constant 0 : i32
    %c0_i32_1 = arith.constant 0 : i32
    return %c0_i32, %c0_i32_0 : i32, i32
  }
  func.func @transform_2(%arg0: i32) -> (i32, i32) {
    %c0_i32 = arith.constant 0 : i32
    %c0_i32_0 = arith.constant 0 : i32
    %c0_i32_1 = arith.constant 0 : i32
    return %c0_i32, %c0_i32_0 : i32, i32
  }
  func.func @transform_3(%arg0: i32) -> (i32, i32) {
    %c0_i32 = arith.constant 0 : i32
    %c0_i32_0 = arith.constant 0 : i32
    %c0_i32_1 = arith.constant 0 : i32
    return %c0_i32, %c0_i32_0 : i32, i32
  }
  func.func @transform_4(%arg0: i32) -> (i32, i32) {
    %c0_i32 = arith.constant 0 : i32
    %c0_i32_0 = arith.constant 0 : i32
    %c0_i32_1 = arith.constant 0 : i32
    return %c0_i32, %c0_i32_0 : i32, i32
  }
  func.func @transform_5(%arg0: i32) -> i32 {
    %c0_i32 = arith.constant 0 : i32
    %c0_i32_0 = arith.constant 0 : i32
    return %c0_i32 : i32
  }
  func.func @transform_6(%arg0: i32) -> (i32, i32) {
    %c0_i32 = arith.constant 0 : i32
    %c0_i32_0 = arith.constant 0 : i32
    return %c0_i32, %arg0 : i32, i32
  }
}

</mosaic_0001>

<bundles_post_ra>
// kernel: tpu_custom_call.1
= control target key start
LH: loop header
LB: loop body
LE: loop exit
PB: predicated region body
PF: predicated region fallthrough
CT: control target
= control target key end

     0   :  { %vm42_vm0 = vcmask 64512   ;;  %s1162_s0 = inlined_call_operand.vmem [shape: f32[8,128], index: 0, kind: input, shape index: {}]   ;;  %s1163_s1 = inlined_call_operand.vmem [shape: f32[128,8], index: 1, kind: input, shape index: {}]   ;;  %s1164_s2 = inlined_call_operand.vmem [shape: f32[128,128], index: 2, kind: input, shape index: {}]   ;;  %s1165_s3 = inlined_call_operand.vmem [shape: f32[128,1], index: 3, kind: input, shape index: {}]   ;;  %s1166_s4 = inlined_call_operand.vmem [shape: f32[128,1], index: 4, kind: input, shape index: {}]   ;;  %s1167_s5 = inlined_call_operand.<no memory space> [shape: f32[1], index: 5, kind: input, shape index: {}]   ;;  %s1168_s6 = inlined_call_operand.hbm [shape: f32[1,128], index: 6, kind: output, shape index: {}]  }
   0x1   :  { %v41_v0 = vld [vmem:[%s1162_s0] sm:$0xff]  ;;  %v26_v2 = vld [vmem:[%s1163_s1 + $0x8] sm:$0xff]  ;;  %v27_v3 = vld [vmem:[%s1163_s1 + $0x10] sm:$0xff] }
   0x2   :  { %v25_v1 = vld [vmem:[%s1163_s1] sm:$0xff]  ;;  %741 = vmatprep.subr.mxu0 %v41_v0  ;;  %v28_v4 = vld [vmem:[%s1163_s1 + $0x18] sm:$0xff] }
   0x3   :  { %743 = vmatprep.mubr.msk.f32.mxu0 %vm42_vm0, %v25_v1  ;;  %742 = vmatpush3.msra.mxu0 %v41_v0  ;;  %v29_v5 = vld [vmem:[%s1163_s1 + $0x20] sm:$0xff] }
   0x4   :  { %744 = vmatmul.mubr.msk.f32.vlgmr.msra.gmra.mrb[0].mxu0 %vm42_vm0, %v26_v2 }
   0x5   :  { %746 = vmatprep.mubr.msk.f32.mxu0 %vm42_vm0, %v27_v3 }
   0x6   :  { %12 = vsyncpa [#allocation4], 0  ;;  %v30_v6 = vld [vmem:[%s1163_s1 + $0x28] sm:$0xff]  ;;  %v31_v7 = vld [vmem:[%s1163_s1 + $0x30] sm:$0xff]  ;;  %v899_v17 = vmov 0  }
   0x7   :  { %v32_v8 = vld [vmem:[%s1163_s1 + $0x38] sm:$0xff]  ;;  %v33_v9 = vld [vmem:[%s1163_s1 + $0x40] sm:$0xff]  ;;  %v34_v10 = vld [vmem:[%s1163_s1 + $0x48] sm:$0xff]  ;;  %873 = vset.pattern.permute.xlu0 %v899_v17  ;;  %874 = vset.pattern.permute.xlu1 %v899_v17 }
   0x8   :  { %747 = vmatmul.mubr.msk.f32.gmra.mrb[2].mxu0 %vm42_vm0, %v28_v4  ;;  %v35_v11 = vld [vmem:[%s1163_s1 + $0x50] sm:$0xff]  ;;  %v36_v12 = vld [vmem:[%s1163_s1 + $0x58] sm:$0xff]  ;;  %v37_v13 = vld [vmem:[%s1163_s1 + $0x60] sm:$0xff] }
   0x9   :  { %749 = vmatprep.mubr.msk.f32.mxu0 %vm42_vm0, %v29_v5  ;;  %v38_v14 = vld [vmem:[%s1163_s1 + $0x68] sm:$0xff]  ;;  %v39_v15 = vld [vmem:[%s1163_s1 + $0x70] sm:$0xff]  ;;  %v40_v16 = vld [vmem:[%s1163_s1 + $0x78] sm:$0xff] }
   0xa   :  { %v268_v18 = vld [vmem:[%s1165_s3] sm:$0xff]  ;;  %v258_v20 = vld [vmem:[%s1164_s2 + $0x30] sm:$0xff]  ;;  %v269_v22 = vld [vmem:[%s1165_s3 + $0x8] sm:$0xff] }
   0xb   :  { %286 = vperm.xlu0 %873, %v268_v18   ;;  %v252_v19 = vld [vmem:[%s1164_s2] sm:$0xff]  ;;  %v270_v21 = vld [vmem:[%s1165_s3 + $0x10] sm:$0xff]  ;;  %808 = vmatprep.mubr.f32.mxu1 %v258_v20  ;;  %v271_v23 = vld [vmem:[%s1165_s3 + $0x18] sm:$0xff] }
   0xc   :  { %750 = vmatmul.mubr.msk.f32.gmra.mrb[4].mxu0 %vm42_vm0, %v30_v6  ;;  %296 = vperm.xlu1 %874, %v270_v21   ;;  %v525_v24 = vld [vmem:[%s1166_s4] sm:$0xff]  ;;  %v526_v25 = vld [vmem:[%s1166_s4 + $0x8] sm:$0xff]  ;;  %v527_v27 = vld [vmem:[%s1166_s4 + $0x10] sm:$0xff] }
   0xd   :  { %752 = vmatprep.mubr.msk.f32.mxu0 %vm42_vm0, %v31_v7  ;;  %v272_v26 = vld [vmem:[%s1165_s3 + $0x20] sm:$0xff]  ;;  %v273_v28 = vld [vmem:[%s1165_s3 + $0x28] sm:$0xff]  ;;  %v528_v29 = vld [vmem:[%s1166_s4 + $0x18] sm:$0xff] }
   0xe   :  { %v274_v30 = vld [vmem:[%s1165_s3 + $0x30] sm:$0xff]  ;;  %v529_v31 = vld [vmem:[%s1166_s4 + $0x20] sm:$0xff]  ;;  %v275_v32 = vld [vmem:[%s1165_s3 + $0x38] sm:$0xff] }
   0xf   :  { %291 = vperm.xlu0 %873, %v269_v22   ;;  %v530_v33 = vld [vmem:[%s1166_s4 + $0x28] sm:$0xff]  ;;  %v276_v34 = vld [vmem:[%s1165_s3 + $0x40] sm:$0xff]  ;;  %v531_v35 = vld [vmem:[%s1166_s4 + $0x30] sm:$0xff] }
  0x10   :  { %753 = vmatmul.mubr.msk.f32.gmra.mrb[6].mxu0 %vm42_vm0, %v32_v8  ;;  %301 = vperm.xlu1 %874, %v271_v23   ;;  %v277_v36 = vld [vmem:[%s1165_s3 + $0x48] sm:$0xff]  ;;  %v532_v37 = vld [vmem:[%s1166_s4 + $0x38] sm:$0xff]  ;;  %v278_v38 = vld [vmem:[%s1165_s3 + $0x50] sm:$0xff] }
  0x11   :  { %755 = vmatprep.mubr.msk.f32.mxu0 %vm42_vm0, %v33_v9  ;;  %v533_v39 = vld [vmem:[%s1166_s4 + $0x40] sm:$0xff]  ;;  %v279_v40 = vld [vmem:[%s1165_s3 + $0x58] sm:$0xff]  ;;  %v534_v41 = vld [vmem:[%s1166_s4 + $0x48] sm:$0xff] }
  0x12   :  { %v280_v42 = vld [vmem:[%s1165_s3 + $0x60] sm:$0xff]  ;;  %v535_v43 = vld [vmem:[%s1166_s4 + $0x50] sm:$0xff]  ;;  %v281_v44 = vld [vmem:[%s1165_s3 + $0x68] sm:$0xff] }
  0x13   :  { %543 = vperm.xlu0 %873, %v525_v24   ;;  %v536_v45 = vld [vmem:[%s1166_s4 + $0x58] sm:$0xff]  ;;  %v282_v46 = vld [vmem:[%s1165_s3 + $0x70] sm:$0xff]  ;;  %v537_v47 = vld [vmem:[%s1166_s4 + $0x60] sm:$0xff] }
  0x14   :  { %756 = vmatmul.mubr.msk.f32.gmra.mrb[8].mxu0 %vm42_vm0, %v34_v10  ;;  %548 = vperm.xlu1 %874, %v526_v25   ;;  %v283_v48 = vld [vmem:[%s1165_s3 + $0x78] sm:$0xff]  ;;  %v538_v49 = vld [vmem:[%s1166_s4 + $0x68] sm:$0xff]  ;;  %v539_v50 = vld [vmem:[%s1166_s4 + $0x70] sm:$0xff] }
  0x15   :  { %758 = vmatprep.mubr.msk.f32.mxu0 %vm42_vm0, %v35_v11  ;;  %v540_v51 = vld [vmem:[%s1166_s4 + $0x78] sm:$0xff]  ;;  %s900_s4 = smov [#allocation3]  }
  0x16   :  { %s668_s20 = sshll.u32 %s900_s4, 4  ;;  %s669_s20 = int_to_ptr.vmem [resolvable:$true] %s668_s20 }
  0x17   :  { %306 = vperm.xlu0 %873, %v272_v26   ;;  %s875_s21 = scalar_lea.vmem %s669_s20, 16  ;;  %s879_s22 = scalar_lea.vmem %s669_s20, 32 }
  0x18   :  { %759 = vmatmul.mubr.msk.f32.gmra.mrb[10].mxu0 %vm42_vm0, %v36_v12  ;;  %553 = vperm.xlu1 %874, %v527_v27   ;;  %p876_p0 = scmp.ne.s32.totalorder %s669_s20, %s875_s21  ;;  %p880_p1 = scmp.lt.s32.totalorder %s669_s20, %s669_s20 }
  0x19   :  { %761 = vmatprep.mubr.msk.f32.mxu0 %vm42_vm0, %v37_v13  ;;  %p881_p2 = scmp.lt.s32.totalorder %s879_s22, %s875_s21 }
  0x1b   :  { %311 = vperm.xlu0 %873, %v273_v28   ;;  %v253_v28 = vld [vmem:[%s1164_s2 + $0x8] sm:$0xff]  ;;  %p882_p3 = por %p881_p2, %p880_p1 }
  0x1c   :  { %762 = vmatmul.mubr.msk.f32.gmra.mrb[12].mxu0 %vm42_vm0, %v38_v14  ;;  %558 = vperm.xlu1 %874, %v528_v29   ;;  %v259_v29 = vld [vmem:[%s1164_s2 + $0x38] sm:$0xff] }
  0x1d   :  { %764 = vmatprep.mubr.msk.f32.mxu0 %vm42_vm0, %v39_v15  ;;  %p883_p4 = pnand %p882_p3, %p876_p0 }
  0x1f   :  { %316 = vperm.xlu0 %873, %v274_v30   ;;  %v254_v30 = vld [vmem:[%s1164_s2 + $0x10] sm:$0xff] }
  0x20   :  { %765 = vmatmul.mubr.msk.f32.gmra.mrb[14].mxu0 %vm42_vm0, %v40_v16  ;;  %563 = vperm.xlu1 %874, %v529_v31   ;;  %v260_v31 = vld [vmem:[%s1164_s2 + $0x40] sm:$0xff] }
  0x21   :  { %799 = vmatprep.mubr.f32.mxu0 %v252_v19 }
  0x23   :  { %321 = vperm.xlu0 %873, %v275_v32   ;;  %v255_v32 = vld [vmem:[%s1164_s2 + $0x18] sm:$0xff] }
  0x24   :  { %568 = vperm.xlu1 %874, %v530_v33   ;;  %v261_v33 = vld [vmem:[%s1164_s2 + $0x48] sm:$0xff] }
  0x27   :  { %326 = vperm.xlu0 %873, %v276_v34   ;;  %v256_v34 = vld [vmem:[%s1164_s2 + $0x20] sm:$0xff] }
  0x28   :  { %573 = vperm.xlu1 %874, %v531_v35   ;;  %v262_v35 = vld [vmem:[%s1164_s2 + $0x50] sm:$0xff] }
  0x2b   :  { %331 = vperm.xlu0 %873, %v277_v36   ;;  %v257_v36 = vld [vmem:[%s1164_s2 + $0x28] sm:$0xff] }
  0x2c   :  { %578 = vperm.xlu1 %874, %v532_v37   ;;  %v263_v37 = vld [vmem:[%s1164_s2 + $0x58] sm:$0xff] }
  0x2f   :  { %336 = vperm.xlu0 %873, %v278_v38   ;;  %v264_v38 = vld [vmem:[%s1164_s2 + $0x60] sm:$0xff] }
  0x30   :  { %583 = vperm.xlu1 %874, %v533_v39   ;;  %v265_v39 = vld [vmem:[%s1164_s2 + $0x68] sm:$0xff] }
  0x33   :  { %341 = vperm.xlu0 %873, %v279_v40   ;;  %v266_v40 = vld [vmem:[%s1164_s2 + $0x70] sm:$0xff] }
  0x34   :  { %588 = vperm.xlu1 %874, %v534_v41   ;;  %v267_v41 = vld [vmem:[%s1164_s2 + $0x78] sm:$0xff] }
  0x37   :  { %346 = vperm.xlu0 %873, %v280_v42  }
  0x38   :  { %593 = vperm.xlu1 %874, %v535_v43  }
  0x3b   :  { %351 = vperm.xlu0 %873, %v281_v44  }
  0x3c   :  { %598 = vperm.xlu1 %874, %v536_v45  }
  0x3f   :  { %356 = vperm.xlu0 %873, %v282_v46  }
  0x40   :  { %603 = vperm.xlu1 %874, %v537_v47  }
  0x43   :  { %361 = vperm.xlu0 %873, %v283_v48  }
  0x44   :  { %608 = vperm.xlu1 %874, %v538_v49  }
  0x47   :  { %613 = vperm.xlu0 %873, %v539_v50  }
  0x48   :  { %618 = vperm.xlu1 %874, %v540_v51  }
  0x8a   :  { %v287_v42 = vpop.permute.xlu0 %286 }
  0x8b   :  { %v297_v43 = vpop.permute.xlu1 %296 }
  0x8e   :  { %v292_v44 = vpop.permute.xlu0 %291 }
  0x8f   :  { %v302_v45 = vpop.permute.xlu1 %301 }
  0x92   :  { %v544_v46 = vpop.permute.xlu0 %543 }
  0x93   :  { %v549_v47 = vpop.permute.xlu1 %548 }
  0x96   :  { %v307_v48 = vpop.permute.xlu0 %306 }
  0x97   :  { %v554_v49 = vpop.permute.xlu1 %553 }
  0x9a   :  { %v312_v50 = vpop.permute.xlu0 %311 }
  0x9b   :  { %v559_v51 = vpop.permute.xlu1 %558 }
  0xd7   :  { %v745_v52 = vpop.f32.mrb[0].mxu0 }
  0xd8   :  { %v237_v53 = vmax.f32 %v745_v52, 0.0  ;;  %v157_v54 = vpop.f32.mrb[1].mxu0  ;;  %v317_v52 = vpop.permute.xlu0 %316 }
  0xd9   :  { %v236_v55 = vmax.f32 %v157_v54, 0.0 }
  0xdb   :  { %v823_v56 = vpack.c.bf16 %v237_v53, %v236_v55  ;;  %v748_v57 = vpop.f32.mrb[2].mxu0  ;;  %v564_v53 = vpop.permute.xlu1 %563 }
  0xdc   :  { %v239_v58 = vmax.f32 %v748_v57, 0.0  ;;  %v167_v59 = vpop.f32.mrb[3].mxu0  ;;  %v322_v54 = vpop.permute.xlu0 %321 }
  0xdd   :  { %v238_v60 = vmax.f32 %v167_v59, 0.0  ;;  %824 = vmatprep.subr.bf16.mxu0 %v823_v56  ;;  %855 = vmatprep.subr.bf16.mxu1 %v823_v56 }
  0xde   :  { %826 = vmatpush3.bf16.msra.mxu0 %v823_v56  ;;  %863 = vmatpush3.bf16.msra.mxu1 %v823_v56 }
  0xdf   :  { %v827_v61 = vpack.c.bf16 %v239_v58, %v238_v60  ;;  %v751_v62 = vpop.f32.mrb[4].mxu0  ;;  %v569_v55 = vpop.permute.xlu1 %568 }
  0xe0   :  { %v241_v63 = vmax.f32 %v751_v62, 0.0  ;;  %v177_v0 = vpop.f32.mrb[5].mxu0  ;;  %v327_v56 = vpop.permute.xlu0 %326 }
  0xe1   :  { %v240_v1 = vmax.f32 %v177_v0, 0.0  ;;  %828 = vmatprep.subr.bf16.mxu0 %v827_v61  ;;  %856 = vmatprep.subr.bf16.mxu1 %v827_v61 }
  0xe2   :  { %830 = vmatpush3.bf16.msra.mxu0 %v827_v61  ;;  %864 = vmatpush3.bf16.msra.mxu1 %v827_v61 }
  0xe3   :  { %v831_v2 = vpack.c.bf16 %v241_v63, %v240_v1  ;;  %v754_v3 = vpop.f32.mrb[6].mxu0  ;;  %v574_v57 = vpop.permute.xlu1 %573 }
  0xe4   :  { %v243_v4 = vmax.f32 %v754_v3, 0.0  ;;  %v187_v5 = vpop.f32.mrb[7].mxu0  ;;  %v332_v58 = vpop.permute.xlu0 %331 }
  0xe5   :  { %v242_v6 = vmax.f32 %v187_v5, 0.0  ;;  %832 = vmatprep.subr.bf16.mxu0 %v831_v2  ;;  %857 = vmatprep.subr.bf16.mxu1 %v831_v2 }
  0xe6   :  { %834 = vmatpush3.bf16.msra.mxu0 %v831_v2  ;;  %865 = vmatpush3.bf16.msra.mxu1 %v831_v2 }
  0xe7   :  { %v835_v7 = vpack.c.bf16 %v243_v4, %v242_v6  ;;  %v757_v8 = vpop.f32.mrb[8].mxu0  ;;  %v579_v59 = vpop.permute.xlu1 %578 }
  0xe8   :  { %v245_v9 = vmax.f32 %v757_v8, 0.0  ;;  %v197_v10 = vpop.f32.mrb[9].mxu0  ;;  %v337_v60 = vpop.permute.xlu0 %336 }
  0xe9   :  { %v244_v11 = vmax.f32 %v197_v10, 0.0  ;;  %836 = vmatprep.subr.bf16.mxu0 %v835_v7  ;;  %858 = vmatprep.subr.bf16.mxu1 %v835_v7 }
  0xea   :  { %838 = vmatpush3.bf16.msra.mxu0 %v835_v7  ;;  %866 = vmatpush3.bf16.msra.mxu1 %v835_v7 }
  0xeb   :  { %v839_v12 = vpack.c.bf16 %v245_v9, %v244_v11  ;;  %v760_v13 = vpop.f32.mrb[10].mxu0  ;;  %v584_v61 = vpop.permute.xlu1 %583 }
  0xec   :  { %v247_v14 = vmax.f32 %v760_v13, 0.0  ;;  %v207_v15 = vpop.f32.mrb[11].mxu0  ;;  %v342_v62 = vpop.permute.xlu0 %341 }
  0xed   :  { %v246_v16 = vmax.f32 %v207_v15, 0.0  ;;  %840 = vmatprep.subr.bf16.mxu0 %v839_v12  ;;  %859 = vmatprep.subr.bf16.mxu1 %v839_v12 }
  0xee   :  { %842 = vmatpush3.bf16.msra.mxu0 %v839_v12  ;;  %867 = vmatpush3.bf16.msra.mxu1 %v839_v12 }
  0xef   :  { %v843_v17 = vpack.c.bf16 %v247_v14, %v246_v16  ;;  %v763_v18 = vpop.f32.mrb[12].mxu0  ;;  %v589_v5 = vpop.permute.xlu1 %588 }
  0xf0   :  { %v249_v19 = vmax.f32 %v763_v18, 0.0  ;;  %v217_v20 = vpop.f32.mrb[13].mxu0  ;;  %v347_v16 = vpop.permute.xlu0 %346 }
  0xf1   :  { %v248_v21 = vmax.f32 %v217_v20, 0.0  ;;  %844 = vmatprep.subr.bf16.mxu0 %v843_v17  ;;  %860 = vmatprep.subr.bf16.mxu1 %v843_v17 }
  0xf2   :  { %846 = vmatpush3.bf16.msra.mxu0 %v843_v17  ;;  %868 = vmatpush3.bf16.msra.mxu1 %v843_v17 }
  0xf3   :  { %v847_v22 = vpack.c.bf16 %v249_v19, %v248_v21  ;;  %v766_v23 = vpop.f32.mrb[14].mxu0 }
  0xf4   :  { %v251_v24 = vmax.f32 %v766_v23, 0.0  ;;  %v227_v25 = vpop.f32.mrb[15].mxu0 }
  0xf5   :  { %v250_v26 = vmax.f32 %v227_v25, 0.0  ;;  %848 = vmatprep.subr.bf16.mxu0 %v847_v22  ;;  %861 = vmatprep.subr.bf16.mxu1 %v847_v22 }
  0xf6   :  { %850 = vmatpush3.bf16.msra.mxu0 %v847_v22  ;;  %869 = vmatpush3.bf16.msra.mxu1 %v847_v22 }
  0xf7   :  { %v851_v27 = vpack.c.bf16 %v251_v24, %v250_v26 }
  0xf9   :  { %852 = vmatprep.subr.bf16.mxu0 %v851_v27  ;;  %862 = vmatprep.subr.bf16.mxu1 %v851_v27 }
  0xfa   :  { %854 = vmatpush3.bf16.msra.mxu0 %v851_v27  ;;  %870 = vmatpush3.bf16.msra.mxu1 %v851_v27 }
  0xfd   :  { %800 = vmatmul.mubr.f32.vlgmr.msra.gmra.mrb[16].mxu0 %v253_v28  ;;  %809 = vmatmul.mubr.f32.vlgmr.msra.gmra.mrb[0].mxu1 %v259_v29  ;;  %v594_v28 = vpop.permute.xlu1 %593 }
  0xfe   :  { %802 = vmatprep.mubr.f32.mxu0 %v254_v30  ;;  %811 = vmatprep.mubr.f32.mxu1 %v260_v31 }
 0x101   :  { %803 = vmatmul.mubr.f32.gmra.mrb[18].mxu0 %v255_v32  ;;  %812 = vmatmul.mubr.f32.gmra.mrb[2].mxu1 %v261_v33 }
 0x102   :  { %805 = vmatprep.mubr.f32.mxu0 %v256_v34  ;;  %814 = vmatprep.mubr.f32.mxu1 %v262_v35 }
 0x105   :  { %806 = vmatmul.mubr.f32.gmra.mrb[20].mxu0 %v257_v36  ;;  %815 = vmatmul.mubr.f32.gmra.mrb[4].mxu1 %v263_v37 }
 0x106   :  { %817 = vmatprep.mubr.f32.mxu1 %v264_v38 }
 0x109   :  { %818 = vmatmul.mubr.f32.gmra.mrb[6].mxu1 %v265_v39 }
 0x10a   :  { %820 = vmatprep.mubr.f32.mxu1 %v266_v40  ;;  %v352_v40 = vpop.permute.xlu0 %351 }
 0x10d   :  { %821 = vmatmul.mubr.f32.gmra.mrb[8].mxu1 %v267_v41 }
 0x1d0   :  { %v801_v63 = vpop.f32.mrb[16].mxu0  ;;  %v810_v0 = vpop.f32.mrb[0].mxu1 }
 0x1d1   :  { %v436_v1 = vadd.f32 %v801_v63, %v292_v44  ;;  %v430_v2 = vpop.f32.mrb[17].mxu0  ;;  %v460_v3 = vpop.f32.mrb[1].mxu1  ;;  %v466_v29 = vadd.f32 %v810_v0, %v322_v54 }
 0x1d2   :  { %v431_v4 = vadd.f32 %v430_v2, %v287_v42  ;;  %v461_v25 = vadd.f32 %v460_v3, %v317_v52 }
 0x1d3   :  { %v510_v6 = vmax.f32 %v436_v1, 0.0  ;;  %v516_v41 = vmax.f32 %v466_v29, 0.0  ;;  %v357_v1 = vpop.permute.xlu0 %356 }
 0x1d4   :  { %v509_v7 = vmax.f32 %v431_v4, 0.0  ;;  %v804_v8 = vpop.f32.mrb[18].mxu0  ;;  %v813_v9 = vpop.f32.mrb[2].mxu1  ;;  %v515_v36 = vmax.f32 %v461_v25, 0.0 }
 0x1d5   :  { %v622_v10 = vmul.f32 %v549_v47, %v510_v6  ;;  %v446_v11 = vadd.f32 %v804_v8, %v302_v45  ;;  %v440_v12 = vpop.f32.mrb[19].mxu0  ;;  %v470_v13 = vpop.f32.mrb[3].mxu1  ;;  %v476_v42 = vadd.f32 %v813_v9, %v332_v58  ;;  %v628_v52 = vmul.f32 %v579_v59, %v516_v41 }
 0x1d6   :  { %v621_v14 = vmul.f32 %v544_v46, %v509_v7  ;;  %v441_v15 = vadd.f32 %v440_v12, %v297_v43  ;;  %v471_v37 = vadd.f32 %v470_v13, %v327_v56  ;;  %v599_v46 = vpop.permute.xlu1 %598 }
 0x1d7   :  { %v512_v18 = vmax.f32 %v446_v11, 0.0  ;;  %v518_v54 = vmax.f32 %v476_v42, 0.0  ;;  %v362_v11 = vpop.permute.xlu0 %361 }
 0x1d8   :  { %v637_v17 = vadd.f32 %v622_v10, %v621_v14  ;;  %v511_v19 = vmax.f32 %v441_v15, 0.0  ;;  %v807_v20 = vpop.f32.mrb[20].mxu0  ;;  %v816_v21 = vpop.f32.mrb[4].mxu1 }
 0x1d9   :  { %v456_v22 = vadd.f32 %v807_v20, %v312_v50  ;;  %v450_v23 = vpop.f32.mrb[21].mxu0  ;;  %v480_v24 = vpop.f32.mrb[5].mxu1  ;;  %v624_v30 = vmul.f32 %v559_v51, %v512_v18  ;;  %v486_v63 = vadd.f32 %v816_v21, %v342_v62  ;;  %v630_v58 = vmul.f32 %v589_v5, %v518_v54 }
 0x1da   :  { %v623_v26 = vmul.f32 %v554_v49, %v511_v19  ;;  %v451_v27 = vadd.f32 %v450_v23, %v307_v48  ;;  %v627_v48 = vmul.f32 %v574_v57, %v515_v36  ;;  %v517_v49 = vmax.f32 %v471_v37, 0.0  ;;  %v604_v4 = vpop.permute.xlu1 %603 }
 0x1db   :  { %v514_v32 = vmax.f32 %v456_v22, 0.0  ;;  %v481_v51 = vadd.f32 %v480_v24, %v337_v60  ;;  %v614_v5 = vpop.permute.xlu0 %613 }
 0x1dc   :  { %v638_v31 = vadd.f32 %v637_v17, %v623_v26  ;;  %v513_v33 = vmax.f32 %v451_v27, 0.0  ;;  %v819_v34 = vpop.f32.mrb[6].mxu1  ;;  %v629_v56 = vmul.f32 %v584_v61, %v517_v49 }
 0x1dd   :  { %v490_v35 = vpop.f32.mrb[7].mxu1  ;;  %v626_v43 = vmul.f32 %v569_v55, %v514_v32  ;;  %v520_v55 = vmax.f32 %v486_v63, 0.0  ;;  %v496_v7 = vadd.f32 %v819_v34, %v352_v40 }
 0x1de   :  { %v625_v38 = vmul.f32 %v564_v53, %v513_v33  ;;  %v639_v39 = vadd.f32 %v638_v31, %v624_v30  ;;  %v519_v53 = vmax.f32 %v481_v51, 0.0  ;;  %v491_v3 = vadd.f32 %v490_v35, %v347_v16  ;;  %v609_v13 = vpop.permute.xlu1 %608 }
 0x1df   :  { %v632_v60 = vmul.f32 %v599_v46, %v520_v55  ;;  %v522_v12 = vmax.f32 %v496_v7, 0.0  ;;  %v659_v30 = vstv %s1167_s5 }
 0x1e0   :  { %v640_v44 = vadd.f32 %v639_v39, %v625_v38  ;;  %v822_v45 = vpop.f32.mrb[8].mxu1  ;;  %v631_v8 = vmul.f32 %v594_v28, %v519_v53  ;;  %v521_v57 = vmax.f32 %v491_v3, 0.0 }
 0x1e1   :  { %v500_v47 = vpop.f32.mrb[9].mxu1  ;;  %v506_v62 = vadd.f32 %v822_v45, %v362_v11  ;;  %v634_v17 = vmul.f32 %v609_v13, %v522_v12 }
 0x1e2   :  { %v641_v50 = vadd.f32 %v640_v44, %v626_v43  ;;  %v501_v10 = vadd.f32 %v500_v47, %v357_v1  ;;  %v633_v14 = vmul.f32 %v604_v4, %v521_v57  ;;  %v619_v21 = vpop.permute.xlu1 %618 }
 0x1e3   :  { %v524_v18 = vmax.f32 %v506_v62, 0.0 }
 0x1e4   :  { %v642_v0 = vadd.f32 %v641_v50, %v627_v48  ;;  %v523_v15 = vmax.f32 %v501_v10, 0.0 }
 0x1e5   :  { %v636_v22 = vmul.f32 %v619_v21, %v524_v18 }
 0x1e6   :  { %v643_v2 = vadd.f32 %v642_v0, %v628_v52  ;;  %v635_v19 = vmul.f32 %v614_v5, %v523_v15 }
 0x1e8   :  { %v644_v6 = vadd.f32 %v643_v2, %v629_v56 }
 0x1ea   :  { %v645_v9 = vadd.f32 %v644_v6, %v630_v58 }
 0x1ec   :  { %v646_v59 = vadd.f32 %v645_v9, %v631_v8 }
 0x1ee   :  { %v647_v61 = vadd.f32 %v646_v59, %v632_v60 }
 0x1f0   :  { %v648_v16 = vadd.f32 %v647_v61, %v633_v14 }
 0x1f2   :  { %v649_v20 = vadd.f32 %v648_v16, %v634_v17 }
 0x1f4   :  { %v650_v23 = vadd.f32 %v649_v20, %v635_v19 }
 0x1f6   :  { %v651_v24 = vadd.f32 %v650_v23, %v636_v22 }
 0x1f8   :  { %v652_v25 = vrot.slane %v651_v24, 4 }
 0x1fa   :  { %v653_v26 = vadd.f32 %v652_v25, %v651_v24 }
 0x1fc   :  { %v654_v27 = vrot.slane %v653_v26, 2 }
 0x1fe   :  { %v655_v28 = vadd.f32 %v654_v27, %v653_v26 }
 0x200   :  { %v656_v29 = vrot.slane %v655_v28, 1 }
 0x202   :  { %v657_v31 = vadd.f32 %v656_v29, %v655_v28 }
 0x204   :  { %v660_v32 = vadd.f32 %v659_v30, %v657_v31 }
 0x206   :  { %661 = vst [vmem:[#allocation3] sm:$0x1] %v660_v32 }
 0x207   :  { %886 = shalt.err (!%p883_p4)
}
 0x208   :  { %s887_s25 = scalar_lea.hbm %s1168_s6, 16 }
 0x209   :  { %p888_p5 = scmp.ne.s32.totalorder %s1168_s6, %s887_s25  ;;  %p891_p6 = scmp.lt.u32.totalorder %s887_s25, %s1168_s6 }
 0x20b   :  { %p893_p7 = pnand %p891_p6, %p888_p5 }
 0x20d   :  { %896 = shalt.err (!%p893_p7)
}
 0x20e   :  { %671 = dma.vmem_to_hbm [thread:$0]  %s669_s20, 16, %s1168_s6, [#allocation4]  }
 0x20f   :  { %897 = dma.done.wait [#allocation4], 16  }
 0x210   :  { %898 = vsyncadd [#allocation4], 4294967280 }
 0x211   :  { %675 = vsyncpa [#allocation4], 1 }

</bundles_post_ra>
